<compile_context>
chip_gen: v7x
topology: tpu7x:2x2x1
jax: 0.10.0
libtpu: 0.0.40
codegen_flags: <defaults>
</compile_context>

<pallas_src>
import functools
import math

import jax
import jax.numpy as jnp
from jax.experimental import pallas as pl
from jax.experimental.pallas import tpu as pltpu


def _transformer_block_kernel(
    xq_ref, xkv_ref,                 # (1, TQ, D) f32, (1, S, D) bf16
    wq_ref, bq_ref,                  # (D, D) bf16 (scale folded), (1, D) f32
    wkv_ref, bkv_ref,                # (D, 2D) bf16, (1, 2D) f32
    wo_ref, bo_ref,                  # (D, D) bf16, (1, D) f32
    w1_ref, b1_ref,                  # (D, F) bf16, (1, F) f32
    w2_ref, b2_ref,                  # (F, D) bf16, (1, D) f32
    g1_ref, be1_ref,                 # (1, D) f32
    g2_ref, be2_ref,                 # (1, D) f32
    out_ref,                         # (1, TQ, D) f32
    kv_scr,                          # (S, 2D) bf16  VMEM scratch (per-batch K/V cache)
    attn_scr,                        # (TQ, D) bf16  VMEM scratch (head-concat slab)
    *, nhead,
):
    f32 = jnp.float32
    bf16 = jnp.bfloat16
    eps = 1e-5

    # ---- per-batch K/V cache: fused projection, computed once per batch ----
    @pl.when(pl.program_id(1) == 0)
    def _():
        kv = jnp.dot(xkv_ref[0], wkv_ref[...],
                     preferred_element_type=f32) + bkv_ref[...]      # (S, 2D) f32
        kv_scr[...] = kv.astype(bf16)

    xq = xq_ref[0]                        # (TQ, D) f32 — residual path stays f32
    xq_b = xq.astype(bf16)
    TQ, D = xq.shape
    hd = D // nhead

    # ---- fused Q projection (1/sqrt(hd) folded into wq/bq by the wrapper) ----
    q_all = (jnp.dot(xq_b, wq_ref[...], preferred_element_type=f32)
             + bq_ref[...]).astype(bf16)                              # (TQ, D)

    # ---- per-head attention; heads written into lane slices of attn_scr ----
    for h in range(nhead):                # static unroll
        lo = h * hd
        q_h = q_all[:, lo:lo + hd]                                    # (TQ, hd) bf16
        k_h = kv_scr[:, lo:lo + hd]                                   # (S, hd)  bf16
        v_h = kv_scr[:, D + lo:D + lo + hd]                           # (S, hd)  bf16

        # scores = q @ k^T via NT dot_general (no materialized transpose)
        s = jax.lax.dot_general(
            q_h, k_h,
            dimension_numbers=(((1,), (1,)), ((), ())),
            preferred_element_type=f32)                               # (TQ, S)

        m = jnp.max(s, axis=-1, keepdims=True)
        p = jnp.exp(s - m)                                            # f32
        inv = pl.reciprocal(jnp.sum(p, axis=-1, keepdims=True), approx=True)
        o_h = jnp.dot(p.astype(bf16), v_h,
                      preferred_element_type=f32) * inv               # (TQ, hd)
        attn_scr[:, lo:lo + hd] = o_h.astype(bf16)

    # ---- fused output projection over all heads (head-concat is free) ----
    attn = jnp.dot(attn_scr[...], wo_ref[...],
                   preferred_element_type=f32) + bo_ref[...]          # (TQ, D)

    # ---------- residual + LayerNorm1 (dropout1 = identity) ----------
    src = xq + attn
    mu = jnp.mean(src, axis=-1, keepdims=True)
    var = jnp.mean((src - mu) ** 2, axis=-1, keepdims=True)
    src = (src - mu) * jax.lax.rsqrt(var + eps) * g1_ref[...] + be1_ref[...]

    # ---------------- feed-forward (ReLU, dropout = identity) ----------------
    h1 = jnp.dot(src.astype(bf16), w1_ref[...],
                 preferred_element_type=f32) + b1_ref[...]
    h1 = jnp.maximum(h1, 0.0)
    ffn = jnp.dot(h1.astype(bf16), w2_ref[...],
                  preferred_element_type=f32) + b2_ref[...]

    # ---------- residual + LayerNorm2 (dropout2 = identity) ----------
    src = src + ffn
    mu = jnp.mean(src, axis=-1, keepdims=True)
    var = jnp.mean((src - mu) ** 2, axis=-1, keepdims=True)
    out_ref[0] = (src - mu) * jax.lax.rsqrt(var + eps) * g2_ref[...] + be2_ref[...]


def transformer_block(src, params, nhead, *, q_tile=None):
    """src: (S, B, D) float32 — PyTorch nn.MultiheadAttention default layout."""
    x = jnp.transpose(src, (1, 0, 2)).astype(jnp.float32)     # (B, S, D) f32
    x_kv = x.astype(jnp.bfloat16)                              # bf16 K/V source
    B, S, D = x.shape
    assert D % nhead == 0
    hd = D // nhead
    scale = 1.0 / math.sqrt(hd)
    F = params["w1"].shape[0]

    # Sequence tile for the query/residual path (bounds VMEM for long S).
    if q_tile is None:
        q_tile = S if S <= 256 else next(
            (t for t in (256, 128, 64, 32, 16, 8) if S % t == 0), S)
    assert S % q_tile == 0
    nq = S // q_tile

    f32, bf16 = jnp.float32, jnp.bfloat16
    w_in = params["in_proj_weight"].astype(f32)                # (3D, D)
    b_in = params["in_proj_bias"].astype(f32)                  # (3D,)

    # Fused, pre-transposed weights (no in-kernel transposes, MXU-wide RHS).
    wq = (w_in[:D] * scale).T.astype(bf16)                     # (D, D), scale folded
    bq = (b_in[:D] * scale).reshape(1, D).astype(f32)
    wkv = w_in[D:].T.astype(bf16)                              # (D, 2D) = [Wk^T | Wv^T]
    bkv = b_in[D:].reshape(1, 2 * D).astype(f32)
    wo = params["out_proj_weight"].astype(f32).T.astype(bf16)  # (D, D)
    bo = params["out_proj_bias"].astype(f32).reshape(1, D)
    w1 = params["w1"].astype(f32).T.astype(bf16)               # (D, F)
    b1 = params["b1"].astype(f32).reshape(1, F)
    w2 = params["w2"].astype(f32).T.astype(bf16)               # (F, D)
    b2 = params["b2"].astype(f32).reshape(1, D)
    g1 = params["g1"].astype(f32).reshape(1, D)
    be1 = params["be1"].astype(f32).reshape(1, D)
    g2 = params["g2"].astype(f32).reshape(1, D)
    be2 = params["be2"].astype(f32).reshape(1, D)

    weights = [wq, bq, wkv, bkv, wo, bo, w1, b1, w2, b2, g1, be1, g2, be2]

    def _const_spec(arr):
        nd = arr.ndim
        return pl.BlockSpec(arr.shape, lambda b, qi, _n=nd: (0,) * _n)

    in_specs = (
        [pl.BlockSpec((1, q_tile, D), lambda b, qi: (b, qi, 0)),   # query/residual tile (f32)
         pl.BlockSpec((1, S, D), lambda b, qi: (b, 0, 0))]         # full sequence, bf16 (K/V)
        + [_const_spec(w) for w in weights]
    )
    out_specs = pl.BlockSpec((1, q_tile, D), lambda b, qi: (b, qi, 0))

    scratch_shapes = [
        pltpu.VMEM((S, 2 * D), bf16),       # per-batch K/V cache
        pltpu.VMEM((q_tile, D), bf16),      # per-head attention output slab
    ]

    # Explicit VMEM budget: resident blocks (double-buffered) + scratch + headroom.
    nbytes = lambda a: int(a.size) * a.dtype.itemsize
    resident = (2 * q_tile * D * 4            # xq block
                + 2 * S * D * 2               # xkv block (bf16)
                + 2 * q_tile * D * 4          # out block
                + 2 * sum(nbytes(w) for w in weights)
                + S * 2 * D * 2 + q_tile * D * 2)
    vmem_limit = int(min(max(2 * resident, 32 * 1024 * 1024), 96 * 1024 * 1024))

    # Advisory cost estimate (projections computed once + attention + FFN).
    flops = int(2 * B * S * (4 * D * D + 2 * D * F) + 4 * B * S * S * D)
    transcendentals = int(B * nhead * S * S)
    bytes_accessed = int(sum(nbytes(w) for w in weights)
                         + B * S * D * (4 + 2 + 4))   # f32 in + bf16 in + f32 out

    out = pl.pallas_call(
        functools.partial(_transformer_block_kernel, nhead=nhead),
        out_shape=jax.ShapeDtypeStruct((B, S, D), f32),
        grid=(B, nq),
        in_specs=in_specs,
        out_specs=out_specs,
        scratch_shapes=scratch_shapes,
        compiler_params=pltpu.CompilerParams(
            dimension_semantics=("parallel", "arbitrary"),
            vmem_limit_bytes=vmem_limit),
        cost_estimate=pl.CostEstimate(
            flops=flops,
            transcendentals=transcendentals,
            bytes_accessed=bytes_accessed),
    )(x, x_kv, *weights)

    return jnp.transpose(out, (1, 0, 2))                        # back to (S, B, D)


def _reference(src, params, nhead):
    """Pure-JAX f32 reference mirroring PyTorch eval-mode TransformerBlock."""
    S, B, D = src.shape
    hd = D // nhead
    x = jnp.transpose(src, (1, 0, 2))                           # (B, S, D)
    qkv = jnp.einsum("bsd,ed->bse", x, params["in_proj_weight"]) + params["in_proj_bias"]
    q, k, v = qkv[..., :D], qkv[..., D:2 * D], qkv[..., 2 * D:]

    def split(t):
        return t.reshape(B, S, nhead, hd).transpose(0, 2, 1, 3)  # (B,H,S,hd)

    q, k, v = split(q) / math.sqrt(hd), split(k), split(v)
    s = jnp.einsum("bhqd,bhkd->bhqk", q, k)
    p = jax.nn.softmax(s, axis=-1)
    a = jnp.einsum("bhqk,bhkd->bhqd", p, v).transpose(0, 2, 1, 3).reshape(B, S, D)
    a = jnp.einsum("bsd,ed->bse", a, params["out_proj_weight"]) + params["out_proj_bias"]

    def ln(t, g, b):
        mu = t.mean(-1, keepdims=True)
        var = ((t - mu) ** 2).mean(-1, keepdims=True)
        return (t - mu) * jax.lax.rsqrt(var + 1e-5) * g + b

    src_ = ln(x + a, params["g1"], params["be1"])
    h1 = jnp.maximum(jnp.einsum("bsd,fd->bsf", src_, params["w1"]) + params["b1"], 0.0)
    ffn = jnp.einsum("bsf,df->bsd", h1, params["w2"]) + params["b2"]
    src_ = ln(src_ + ffn, params["g2"], params["be2"])
    return jnp.transpose(src_, (1, 0, 2))


if __name__ == "__main__":
    S, B, D, H, F = 8, 2, 32, 4, 64   # seq, batch, d_model, nhead, dim_feedforward

    key = jax.random.PRNGKey(0)
    ks = jax.random.split(key, 10)
    init = lambda k, shape, s=0.05: (s * jax.random.normal(k, shape)).astype(jnp.float32)

    params = {
        "in_proj_weight": init(ks[0], (3 * D, D)),
        "in_proj_bias":   init(ks[1], (3 * D,)),
        "out_proj_weight": init(ks[2], (D, D)),
        "out_proj_bias":   init(ks[3], (D,)),
        "w1": init(ks[4], (F, D)),
        "b1": init(ks[5], (F,)),
        "w2": init(ks[6], (D, F)),
        "b2": init(ks[7], (D,)),
        "g1": jnp.ones((D,), jnp.float32),
        "be1": jnp.zeros((D,), jnp.float32),
        "g2": jnp.ones((D,), jnp.float32),
        "be2": jnp.zeros((D,), jnp.float32),
    }

    src = jax.random.normal(ks[8], (S, B, D), jnp.float32)

    out = transformer_block(src, params, H)
    jax.block_until_ready(out)

    ref = _reference(src, params, H)
    assert out.shape == (S, B, D)
    # Tolerance loosened vs f32: kernel matmuls use bf16 MXU inputs (f32 accumulation),
    # the K/V cache is stored in bf16, and the softmax uses an approx-EUP reciprocal.
    assert jnp.allclose(out, ref, rtol=1e-2, atol=1e-2), "mismatch vs pure-JAX reference"

    print("KERNEL_OK")
</pallas_src>

<mosaic_0001>
module attributes {stable_mosaic.version = 11 : i64} {
  func.func @_transformer_block_kernel(%arg0: i32, %arg1: i32, %arg2: memref<1x8x32xf32, #tpu.memory_space<vmem>>, %arg3: memref<1x8x32xbf16, #tpu.memory_space<vmem>>, %arg4: memref<32x32xbf16, #tpu.memory_space<vmem>>, %arg5: memref<1x32xf32, #tpu.memory_space<vmem>>, %arg6: memref<32x64xbf16, #tpu.memory_space<vmem>>, %arg7: memref<1x64xf32, #tpu.memory_space<vmem>>, %arg8: memref<32x32xbf16, #tpu.memory_space<vmem>>, %arg9: memref<1x32xf32, #tpu.memory_space<vmem>>, %arg10: memref<32x64xbf16, #tpu.memory_space<vmem>>, %arg11: memref<1x64xf32, #tpu.memory_space<vmem>>, %arg12: memref<64x32xbf16, #tpu.memory_space<vmem>>, %arg13: memref<1x32xf32, #tpu.memory_space<vmem>>, %arg14: memref<1x32xf32, #tpu.memory_space<vmem>>, %arg15: memref<1x32xf32, #tpu.memory_space<vmem>>, %arg16: memref<1x32xf32, #tpu.memory_space<vmem>>, %arg17: memref<1x32xf32, #tpu.memory_space<vmem>>, %arg18: memref<1x8x32xf32, #tpu.memory_space<vmem>>, %arg19: memref<8x64xbf16, #tpu.memory_space<vmem>>, %arg20: memref<8x32xbf16, #tpu.memory_space<vmem>>) attributes {dimension_semantics = [#tpu.dimension_semantics<parallel>, #tpu.dimension_semantics<arbitrary>], iteration_bounds = array<i64: 2, 1>, scalar_prefetch = 0 : i64, scratch_operands = 2 : i64, tpu.core_type = #tpu.core_type<tc>, window_params = [{transform_indices = @transform_0, window_bounds = array<i64: 1, 8, 32>}, {transform_indices = @transform_1, window_bounds = array<i64: 1, 8, 32>}, {pipeline_mode = #tpu.pipeline_mode<synchronous>, transform_indices = @transform_2, window_bounds = array<i64: 32, 32>}, {pipeline_mode = #tpu.pipeline_mode<synchronous>, transform_indices = @transform_3, window_bounds = array<i64: 1, 32>}, {pipeline_mode = #tpu.pipeline_mode<synchronous>, transform_indices = @transform_4, window_bounds = array<i64: 32, 64>}, {pipeline_mode = #tpu.pipeline_mode<synchronous>, transform_indices = @transform_5, window_bounds = array<i64: 1, 64>}, {pipeline_mode = #tpu.pipeline_mode<synchronous>, transform_indices = @transform_6, window_bounds = array<i64: 32, 32>}, {pipeline_mode = #tpu.pipeline_mode<synchronous>, transform_indices = @transform_7, window_bounds = array<i64: 1, 32>}, {pipeline_mode = #tpu.pipeline_mode<synchronous>, transform_indices = @transform_8, window_bounds = array<i64: 32, 64>}, {pipeline_mode = #tpu.pipeline_mode<synchronous>, transform_indices = @transform_9, window_bounds = array<i64: 1, 64>}, {pipeline_mode = #tpu.pipeline_mode<synchronous>, transform_indices = @transform_10, window_bounds = array<i64: 64, 32>}, {pipeline_mode = #tpu.pipeline_mode<synchronous>, transform_indices = @transform_11, window_bounds = array<i64: 1, 32>}, {pipeline_mode = #tpu.pipeline_mode<synchronous>, transform_indices = @transform_12, window_bounds = array<i64: 1, 32>}, {pipeline_mode = #tpu.pipeline_mode<synchronous>, transform_indices = @transform_13, window_bounds = array<i64: 1, 32>}, {pipeline_mode = #tpu.pipeline_mode<synchronous>, transform_indices = @transform_14, window_bounds = array<i64: 1, 32>}, {pipeline_mode = #tpu.pipeline_mode<synchronous>, transform_indices = @transform_15, window_bounds = array<i64: 1, 32>}, {transform_indices = @transform_16, window_bounds = array<i64: 1, 8, 32>}]} {
    %c0_i32 = arith.constant 0 : i32
    %0 = arith.cmpi eq, %arg1, %c0_i32 : i32
    %1 = arith.extui %0 : i1 to i32
    %c0_i32_0 = arith.constant 0 : i32
    %2 = arith.cmpi ne, %1, %c0_i32_0 : i32
    scf.if %2 {
      %c0_79 = arith.constant 0 : index
      %c0_80 = arith.constant 0 : index
      %c0_81 = arith.constant 0 : index
      %157 = vector.load %arg3[%c0_79, %c0_80, %c0_81] : memref<1x8x32xbf16, #tpu.memory_space<vmem>>, vector<1x8x32xbf16>
      %158 = vector.shape_cast %157 : vector<1x8x32xbf16> to vector<8x32xbf16>
      %c0_82 = arith.constant 0 : index
      %c0_83 = arith.constant 0 : index
      %159 = vector.load %arg6[%c0_82, %c0_83] : memref<32x64xbf16, #tpu.memory_space<vmem>>, vector<32x64xbf16>
      %cst_84 = arith.constant dense<0.000000e+00> : vector<8x64xf32>
      %160 = tpu.matmul %158, %159, %cst_84 {dimension_numbers = #tpu.dot_dimension_numbers<[1], [0], [0], [1], [0, 0, 1, 1], [], []>} : vector<8x32xbf16>, vector<32x64xbf16>, vector<8x64xf32> -> vector<8x64xf32>
      %c0_85 = arith.constant 0 : index
      %c0_86 = arith.constant 0 : index
      %161 = vector.load %arg7[%c0_85, %c0_86] : memref<1x64xf32, #tpu.memory_space<vmem>>, vector<1x64xf32>
      %162 = vector.broadcast %161 : vector<1x64xf32> to vector<8x64xf32>
      %163 = arith.addf %160, %162 : vector<8x64xf32>
      %164 = arith.truncf %163 : vector<8x64xf32> to vector<8x64xbf16>
      %c0_87 = arith.constant 0 : index
      %c0_88 = arith.constant 0 : index
      %165 = vector.load %arg19[%c0_87, %c0_88] : memref<8x64xbf16, #tpu.memory_space<vmem>>, vector<8x64xbf16>
      tpu.vector_store %arg19[%c0_87, %c0_88], %164 {strides = array<i32>} : memref<8x64xbf16, #tpu.memory_space<vmem>>, vector<8x64xbf16>,
    } else {
    }
    %c0 = arith.constant 0 : index
    %c0_1 = arith.constant 0 : index
    %c0_2 = arith.constant 0 : index
    %3 = vector.load %arg2[%c0, %c0_1, %c0_2] : memref<1x8x32xf32, #tpu.memory_space<vmem>>, vector<1x8x32xf32>
    %4 = vector.shape_cast %3 : vector<1x8x32xf32> to vector<8x32xf32>
    %5 = arith.truncf %4 : vector<8x32xf32> to vector<8x32xbf16>
    %c0_3 = arith.constant 0 : index
    %c0_4 = arith.constant 0 : index
    %6 = vector.load %arg4[%c0_3, %c0_4] : memref<32x32xbf16, #tpu.memory_space<vmem>>, vector<32x32xbf16>
    %cst = arith.constant dense<0.000000e+00> : vector<8x32xf32>
    %7 = tpu.matmul %5, %6, %cst {dimension_numbers = #tpu.dot_dimension_numbers<[1], [0], [0], [1], [0, 0, 1, 1], [], []>} : vector<8x32xbf16>, vector<32x32xbf16>, vector<8x32xf32> -> vector<8x32xf32>
    %c0_5 = arith.constant 0 : index
    %c0_6 = arith.constant 0 : index
    %8 = vector.load %arg5[%c0_5, %c0_6] : memref<1x32xf32, #tpu.memory_space<vmem>>, vector<1x32xf32>
    %9 = vector.broadcast %8 : vector<1x32xf32> to vector<8x32xf32>
    %10 = arith.addf %7, %9 : vector<8x32xf32>
    %11 = arith.truncf %10 : vector<8x32xf32> to vector<8x32xbf16>
    %12 = vector.extract_strided_slice %11 {offsets = [0, 0], sizes = [8, 8], strides = [1, 1]} : vector<8x32xbf16> to vector<8x8xbf16>
    %c0_7 = arith.constant 0 : index
    %c0_8 = arith.constant 0 : index
    %13 = vector.load %arg19[%c0_7, %c0_8] : memref<8x64xbf16, #tpu.memory_space<vmem>>, vector<8x8xbf16>
    %c0_9 = arith.constant 0 : index
    %c32 = arith.constant 32 : index
    %14 = vector.load %arg19[%c0_9, %c32] : memref<8x64xbf16, #tpu.memory_space<vmem>>, vector<8x8xbf16>
    %cst_10 = arith.constant dense<0.000000e+00> : vector<8x8xf32>
    %15 = tpu.matmul %12, %13, %cst_10 {dimension_numbers = #tpu.dot_dimension_numbers<[1], [1], [0], [0], [0, 0, 1, 0], [], []>} : vector<8x8xbf16>, vector<8x8xbf16>, vector<8x8xf32> -> vector<8x8xf32>
    %cst_11 = arith.constant dense<0xFF800000> : vector<8xf32>
    %16 = vector.multi_reduction <maximumf>, %15, %cst_11 [1] : vector<8x8xf32> to vector<8xf32>
    %17 = vector.shape_cast %16 : vector<8xf32> to vector<8x1xf32>
    %18 = vector.broadcast %17 : vector<8x1xf32> to vector<8x8xf32>
    %19 = arith.subf %15, %18 : vector<8x8xf32>
    %20 = math.exp %19 : vector<8x8xf32>
    %cst_12 = arith.constant dense<0.000000e+00> : vector<8xf32>
    %21 = vector.multi_reduction <add>, %20, %cst_12 [1] : vector<8x8xf32> to vector<8xf32>
    %22 = vector.shape_cast %21 : vector<8xf32> to vector<8x1xf32>
    %23 = tpu.reciprocal %22 {approx = true} : vector<8x1xf32> -> vector<8x1xf32>
    %24 = arith.truncf %20 : vector<8x8xf32> to vector<8x8xbf16>
    %cst_13 = arith.constant dense<0.000000e+00> : vector<8x8xf32>
    %25 = tpu.matmul %24, %14, %cst_13 {dimension_numbers = #tpu.dot_dimension_numbers<[1], [0], [0], [1], [0, 0, 1, 1], [], []>} : vector<8x8xbf16>, vector<8x8xbf16>, vector<8x8xf32> -> vector<8x8xf32>
    %26 = vector.broadcast %23 : vector<8x1xf32> to vector<8x8xf32>
    %27 = arith.mulf %25, %26 : vector<8x8xf32>
    %28 = arith.truncf %27 : vector<8x8xf32> to vector<8x8xbf16>
    %c0_14 = arith.constant 0 : index
    %c0_15 = arith.constant 0 : index
    %29 = vector.load %arg20[%c0_14, %c0_15] : memref<8x32xbf16, #tpu.memory_space<vmem>>, vector<8x8xbf16>
    tpu.vector_store %arg20[%c0_14, %c0_15], %28 {strides = array<i32>} : memref<8x32xbf16, #tpu.memory_space<vmem>>, vector<8x8xbf16>,
    %30 = vector.extract_strided_slice %11 {offsets = [0, 8], sizes = [8, 8], strides = [1, 1]} : vector<8x32xbf16> to vector<8x8xbf16>
    %c0_16 = arith.constant 0 : index
    %c8 = arith.constant 8 : index
    %31 = vector.load %arg19[%c0_16, %c8] : memref<8x64xbf16, #tpu.memory_space<vmem>>, vector<8x8xbf16>
    %c0_17 = arith.constant 0 : index
    %c40 = arith.constant 40 : index
    %32 = vector.load %arg19[%c0_17, %c40] : memref<8x64xbf16, #tpu.memory_space<vmem>>, vector<8x8xbf16>
    %cst_18 = arith.constant dense<0.000000e+00> : vector<8x8xf32>
    %33 = tpu.matmul %30, %31, %cst_18 {dimension_numbers = #tpu.dot_dimension_numbers<[1], [1], [0], [0], [0, 0, 1, 0], [], []>} : vector<8x8xbf16>, vector<8x8xbf16>, vector<8x8xf32> -> vector<8x8xf32>
    %cst_19 = arith.constant dense<0xFF800000> : vector<8xf32>
    %34 = vector.multi_reduction <maximumf>, %33, %cst_19 [1] : vector<8x8xf32> to vector<8xf32>
    %35 = vector.shape_cast %34 : vector<8xf32> to vector<8x1xf32>
    %36 = vector.broadcast %35 : vector<8x1xf32> to vector<8x8xf32>
    %37 = arith.subf %33, %36 : vector<8x8xf32>
    %38 = math.exp %37 : vector<8x8xf32>
    %cst_20 = arith.constant dense<0.000000e+00> : vector<8xf32>
    %39 = vector.multi_reduction <add>, %38, %cst_20 [1] : vector<8x8xf32> to vector<8xf32>
    %40 = vector.shape_cast %39 : vector<8xf32> to vector<8x1xf32>
    %41 = tpu.reciprocal %40 {approx = true} : vector<8x1xf32> -> vector<8x1xf32>
    %42 = arith.truncf %38 : vector<8x8xf32> to vector<8x8xbf16>
    %cst_21 = arith.constant dense<0.000000e+00> : vector<8x8xf32>
    %43 = tpu.matmul %42, %32, %cst_21 {dimension_numbers = #tpu.dot_dimension_numbers<[1], [0], [0], [1], [0, 0, 1, 1], [], []>} : vector<8x8xbf16>, vector<8x8xbf16>, vector<8x8xf32> -> vector<8x8xf32>
    %44 = vector.broadcast %41 : vector<8x1xf32> to vector<8x8xf32>
    %45 = arith.mulf %43, %44 : vector<8x8xf32>
    %46 = arith.truncf %45 : vector<8x8xf32> to vector<8x8xbf16>
    %c0_22 = arith.constant 0 : index
    %c8_23 = arith.constant 8 : index
    %47 = vector.load %arg20[%c0_22, %c8_23] : memref<8x32xbf16, #tpu.memory_space<vmem>>, vector<8x8xbf16>
    tpu.vector_store %arg20[%c0_22, %c8_23], %46 {strides = array<i32>} : memref<8x32xbf16, #tpu.memory_space<vmem>>, vector<8x8xbf16>,
    %48 = vector.extract_strided_slice %11 {offsets = [0, 16], sizes = [8, 8], strides = [1, 1]} : vector<8x32xbf16> to vector<8x8xbf16>
    %c0_24 = arith.constant 0 : index
    %c16 = arith.constant 16 : index
    %49 = vector.load %arg19[%c0_24, %c16] : memref<8x64xbf16, #tpu.memory_space<vmem>>, vector<8x8xbf16>
    %c0_25 = arith.constant 0 : index
    %c48 = arith.constant 48 : index
    %50 = vector.load %arg19[%c0_25, %c48] : memref<8x64xbf16, #tpu.memory_space<vmem>>, vector<8x8xbf16>
    %cst_26 = arith.constant dense<0.000000e+00> : vector<8x8xf32>
    %51 = tpu.matmul %48, %49, %cst_26 {dimension_numbers = #tpu.dot_dimension_numbers<[1], [1], [0], [0], [0, 0, 1, 0], [], []>} : vector<8x8xbf16>, vector<8x8xbf16>, vector<8x8xf32> -> vector<8x8xf32>
    %cst_27 = arith.constant dense<0xFF800000> : vector<8xf32>
    %52 = vector.multi_reduction <maximumf>, %51, %cst_27 [1] : vector<8x8xf32> to vector<8xf32>
    %53 = vector.shape_cast %52 : vector<8xf32> to vector<8x1xf32>
    %54 = vector.broadcast %53 : vector<8x1xf32> to vector<8x8xf32>
    %55 = arith.subf %51, %54 : vector<8x8xf32>
    %56 = math.exp %55 : vector<8x8xf32>
    %cst_28 = arith.constant dense<0.000000e+00> : vector<8xf32>
    %57 = vector.multi_reduction <add>, %56, %cst_28 [1] : vector<8x8xf32> to vector<8xf32>
    %58 = vector.shape_cast %57 : vector<8xf32> to vector<8x1xf32>
    %59 = tpu.reciprocal %58 {approx = true} : vector<8x1xf32> -> vector<8x1xf32>
    %60 = arith.truncf %56 : vector<8x8xf32> to vector<8x8xbf16>
    %cst_29 = arith.constant dense<0.000000e+00> : vector<8x8xf32>
    %61 = tpu.matmul %60, %50, %cst_29 {dimension_numbers = #tpu.dot_dimension_numbers<[1], [0], [0], [1], [0, 0, 1, 1], [], []>} : vector<8x8xbf16>, vector<8x8xbf16>, vector<8x8xf32> -> vector<8x8xf32>
    %62 = vector.broadcast %59 : vector<8x1xf32> to vector<8x8xf32>
    %63 = arith.mulf %61, %62 : vector<8x8xf32>
    %64 = arith.truncf %63 : vector<8x8xf32> to vector<8x8xbf16>
    %c0_30 = arith.constant 0 : index
    %c16_31 = arith.constant 16 : index
    %65 = vector.load %arg20[%c0_30, %c16_31] : memref<8x32xbf16, #tpu.memory_space<vmem>>, vector<8x8xbf16>
    tpu.vector_store %arg20[%c0_30, %c16_31], %64 {strides = array<i32>} : memref<8x32xbf16, #tpu.memory_space<vmem>>, vector<8x8xbf16>,
    %66 = vector.extract_strided_slice %11 {offsets = [0, 24], sizes = [8, 8], strides = [1, 1]} : vector<8x32xbf16> to vector<8x8xbf16>
    %c0_32 = arith.constant 0 : index
    %c24 = arith.constant 24 : index
    %67 = vector.load %arg19[%c0_32, %c24] : memref<8x64xbf16, #tpu.memory_space<vmem>>, vector<8x8xbf16>
    %c0_33 = arith.constant 0 : index
    %c56 = arith.constant 56 : index
    %68 = vector.load %arg19[%c0_33, %c56] : memref<8x64xbf16, #tpu.memory_space<vmem>>, vector<8x8xbf16>
    %cst_34 = arith.constant dense<0.000000e+00> : vector<8x8xf32>
    %69 = tpu.matmul %66, %67, %cst_34 {dimension_numbers = #tpu.dot_dimension_numbers<[1], [1], [0], [0], [0, 0, 1, 0], [], []>} : vector<8x8xbf16>, vector<8x8xbf16>, vector<8x8xf32> -> vector<8x8xf32>
    %cst_35 = arith.constant dense<0xFF800000> : vector<8xf32>
    %70 = vector.multi_reduction <maximumf>, %69, %cst_35 [1] : vector<8x8xf32> to vector<8xf32>
    %71 = vector.shape_cast %70 : vector<8xf32> to vector<8x1xf32>
    %72 = vector.broadcast %71 : vector<8x1xf32> to vector<8x8xf32>
    %73 = arith.subf %69, %72 : vector<8x8xf32>
    %74 = math.exp %73 : vector<8x8xf32>
    %cst_36 = arith.constant dense<0.000000e+00> : vector<8xf32>
    %75 = vector.multi_reduction <add>, %74, %cst_36 [1] : vector<8x8xf32> to vector<8xf32>
    %76 = vector.shape_cast %75 : vector<8xf32> to vector<8x1xf32>
    %77 = tpu.reciprocal %76 {approx = true} : vector<8x1xf32> -> vector<8x1xf32>
    %78 = arith.truncf %74 : vector<8x8xf32> to vector<8x8xbf16>
    %cst_37 = arith.constant dense<0.000000e+00> : vector<8x8xf32>
    %79 = tpu.matmul %78, %68, %cst_37 {dimension_numbers = #tpu.dot_dimension_numbers<[1], [0], [0], [1], [0, 0, 1, 1], [], []>} : vector<8x8xbf16>, vector<8x8xbf16>, vector<8x8xf32> -> vector<8x8xf32>
    %80 = vector.broadcast %77 : vector<8x1xf32> to vector<8x8xf32>
    %81 = arith.mulf %79, %80 : vector<8x8xf32>
    %82 = arith.truncf %81 : vector<8x8xf32> to vector<8x8xbf16>
    %c0_38 = arith.constant 0 : index
    %c24_39 = arith.constant 24 : index
    %83 = vector.load %arg20[%c0_38, %c24_39] : memref<8x32xbf16, #tpu.memory_space<vmem>>, vector<8x8xbf16>
    tpu.vector_store %arg20[%c0_38, %c24_39], %82 {strides = array<i32>} : memref<8x32xbf16, #tpu.memory_space<vmem>>, vector<8x8xbf16>,
    %c0_40 = arith.constant 0 : index
    %c0_41 = arith.constant 0 : index
    %84 = vector.load %arg20[%c0_40, %c0_41] : memref<8x32xbf16, #tpu.memory_space<vmem>>, vector<8x32xbf16>
    %c0_42 = arith.constant 0 : index
    %c0_43 = arith.constant 0 : index
    %85 = vector.load %arg8[%c0_42, %c0_43] : memref<32x32xbf16, #tpu.memory_space<vmem>>, vector<32x32xbf16>
    %cst_44 = arith.constant dense<0.000000e+00> : vector<8x32xf32>
    %86 = tpu.matmul %84, %85, %cst_44 {dimension_numbers = #tpu.dot_dimension_numbers<[1], [0], [0], [1], [0, 0, 1, 1], [], []>} : vector<8x32xbf16>, vector<32x32xbf16>, vector<8x32xf32> -> vector<8x32xf32>
    %c0_45 = arith.constant 0 : index
    %c0_46 = arith.constant 0 : index
    %87 = vector.load %arg9[%c0_45, %c0_46] : memref<1x32xf32, #tpu.memory_space<vmem>>, vector<1x32xf32>
    %88 = vector.broadcast %87 : vector<1x32xf32> to vector<8x32xf32>
    %89 = arith.addf %86, %88 : vector<8x32xf32>
    %90 = arith.addf %4, %89 : vector<8x32xf32>
    %cst_47 = arith.constant dense<0.000000e+00> : vector<8xf32>
    %91 = vector.multi_reduction <add>, %90, %cst_47 [1] : vector<8x32xf32> to vector<8xf32>
    %92 = vector.shape_cast %91 : vector<8xf32> to vector<8x1xf32>
    %cst_48 = arith.constant 3.200000e+01 : f32
    %93 = vector.broadcast %cst_48 : f32 to vector<8x1xf32>
    %94 = arith.divf %92, %93 : vector<8x1xf32>
    %95 = vector.broadcast %94 : vector<8x1xf32> to vector<8x32xf32>
    %96 = arith.subf %90, %95 : vector<8x32xf32>
    %97 = arith.mulf %96, %96 : vector<8x32xf32>
    %cst_49 = arith.constant dense<0.000000e+00> : vector<8xf32>
    %98 = vector.multi_reduction <add>, %97, %cst_49 [1] : vector<8x32xf32> to vector<8xf32>
    %99 = vector.shape_cast %98 : vector<8xf32> to vector<8x1xf32>
    %cst_50 = arith.constant 3.200000e+01 : f32
    %100 = vector.broadcast %cst_50 : f32 to vector<8x1xf32>
    %101 = arith.divf %99, %100 : vector<8x1xf32>
    %102 = vector.broadcast %94 : vector<8x1xf32> to vector<8x32xf32>
    %103 = arith.subf %90, %102 : vector<8x32xf32>
    %cst_51 = arith.constant 9.99999974E-6 : f32
    %104 = vector.broadcast %cst_51 : f32 to vector<8x1xf32>
    %105 = arith.addf %101, %104 : vector<8x1xf32>
    %106 = math.rsqrt %105 : vector<8x1xf32>
    %107 = vector.broadcast %106 : vector<8x1xf32> to vector<8x32xf32>
    %108 = arith.mulf %103, %107 : vector<8x32xf32>
    %c0_52 = arith.constant 0 : index
    %c0_53 = arith.constant 0 : index
    %109 = vector.load %arg14[%c0_52, %c0_53] : memref<1x32xf32, #tpu.memory_space<vmem>>, vector<1x32xf32>
    %110 = vector.broadcast %109 : vector<1x32xf32> to vector<8x32xf32>
    %111 = arith.mulf %108, %110 : vector<8x32xf32>
    %c0_54 = arith.constant 0 : index
    %c0_55 = arith.constant 0 : index
    %112 = vector.load %arg15[%c0_54, %c0_55] : memref<1x32xf32, #tpu.memory_space<vmem>>, vector<1x32xf32>
    %113 = vector.broadcast %112 : vector<1x32xf32> to vector<8x32xf32>
    %114 = arith.addf %111, %113 : vector<8x32xf32>
    %115 = arith.truncf %114 : vector<8x32xf32> to vector<8x32xbf16>
    %c0_56 = arith.constant 0 : index
    %c0_57 = arith.constant 0 : index
    %116 = vector.load %arg10[%c0_56, %c0_57] : memref<32x64xbf16, #tpu.memory_space<vmem>>, vector<32x64xbf16>
    %cst_58 = arith.constant dense<0.000000e+00> : vector<8x64xf32>
    %117 = tpu.matmul %115, %116, %cst_58 {dimension_numbers = #tpu.dot_dimension_numbers<[1], [0], [0], [1], [0, 0, 1, 1], [], []>} : vector<8x32xbf16>, vector<32x64xbf16>, vector<8x64xf32> -> vector<8x64xf32>
    %c0_59 = arith.constant 0 : index
    %c0_60 = arith.constant 0 : index
    %118 = vector.load %arg11[%c0_59, %c0_60] : memref<1x64xf32, #tpu.memory_space<vmem>>, vector<1x64xf32>
    %119 = vector.broadcast %118 : vector<1x64xf32> to vector<8x64xf32>
    %120 = arith.addf %117, %119 : vector<8x64xf32>
    %cst_61 = arith.constant 0.000000e+00 : f32
    %121 = vector.broadcast %cst_61 : f32 to vector<8x64xf32>
    %122 = arith.maximumf %120, %121 : vector<8x64xf32>
    %123 = arith.truncf %122 : vector<8x64xf32> to vector<8x64xbf16>
    %c0_62 = arith.constant 0 : index
    %c0_63 = arith.constant 0 : index
    %124 = vector.load %arg12[%c0_62, %c0_63] : memref<64x32xbf16, #tpu.memory_space<vmem>>, vector<64x32xbf16>
    %cst_64 = arith.constant dense<0.000000e+00> : vector<8x32xf32>
    %125 = tpu.matmul %123, %124, %cst_64 {dimension_numbers = #tpu.dot_dimension_numbers<[1], [0], [0], [1], [0, 0, 1, 1], [], []>} : vector<8x64xbf16>, vector<64x32xbf16>, vector<8x32xf32> -> vector<8x32xf32>
    %c0_65 = arith.constant 0 : index
    %c0_66 = arith.constant 0 : index
    %126 = vector.load %arg13[%c0_65, %c0_66] : memref<1x32xf32, #tpu.memory_space<vmem>>, vector<1x32xf32>
    %127 = vector.broadcast %126 : vector<1x32xf32> to vector<8x32xf32>
    %128 = arith.addf %125, %127 : vector<8x32xf32>
    %129 = arith.addf %114, %128 : vector<8x32xf32>
    %cst_67 = arith.constant dense<0.000000e+00> : vector<8xf32>
    %130 = vector.multi_reduction <add>, %129, %cst_67 [1] : vector<8x32xf32> to vector<8xf32>
    %131 = vector.shape_cast %130 : vector<8xf32> to vector<8x1xf32>
    %cst_68 = arith.constant 3.200000e+01 : f32
    %132 = vector.broadcast %cst_68 : f32 to vector<8x1xf32>
    %133 = arith.divf %131, %132 : vector<8x1xf32>
    %134 = vector.broadcast %133 : vector<8x1xf32> to vector<8x32xf32>
    %135 = arith.subf %129, %134 : vector<8x32xf32>
    %136 = arith.mulf %135, %135 : vector<8x32xf32>
    %cst_69 = arith.constant dense<0.000000e+00> : vector<8xf32>
    %137 = vector.multi_reduction <add>, %136, %cst_69 [1] : vector<8x32xf32> to vector<8xf32>
    %138 = vector.shape_cast %137 : vector<8xf32> to vector<8x1xf32>
    %cst_70 = arith.constant 3.200000e+01 : f32
    %139 = vector.broadcast %cst_70 : f32 to vector<8x1xf32>
    %140 = arith.divf %138, %139 : vector<8x1xf32>
    %141 = vector.broadcast %133 : vector<8x1xf32> to vector<8x32xf32>
    %142 = arith.subf %129, %141 : vector<8x32xf32>
    %cst_71 = arith.constant 9.99999974E-6 : f32
    %143 = vector.broadcast %cst_71 : f32 to vector<8x1xf32>
    %144 = arith.addf %140, %143 : vector<8x1xf32>
    %145 = math.rsqrt %144 : vector<8x1xf32>
    %146 = vector.broadcast %145 : vector<8x1xf32> to vector<8x32xf32>
    %147 = arith.mulf %142, %146 : vector<8x32xf32>
    %c0_72 = arith.constant 0 : index
    %c0_73 = arith.constant 0 : index
    %148 = vector.load %arg16[%c0_72, %c0_73] : memref<1x32xf32, #tpu.memory_space<vmem>>, vector<1x32xf32>
    %149 = vector.broadcast %148 : vector<1x32xf32> to vector<8x32xf32>
    %150 = arith.mulf %147, %149 : vector<8x32xf32>
    %c0_74 = arith.constant 0 : index
    %c0_75 = arith.constant 0 : index
    %151 = vector.load %arg17[%c0_74, %c0_75] : memref<1x32xf32, #tpu.memory_space<vmem>>, vector<1x32xf32>
    %152 = vector.broadcast %151 : vector<1x32xf32> to vector<8x32xf32>
    %153 = arith.addf %150, %152 : vector<8x32xf32>
    %c0_76 = arith.constant 0 : index
    %c0_77 = arith.constant 0 : index
    %c0_78 = arith.constant 0 : index
    %154 = vector.load %arg18[%c0_76, %c0_77, %c0_78] : memref<1x8x32xf32, #tpu.memory_space<vmem>>, vector<1x8x32xf32>
    %155 = vector.shape_cast %154 : vector<1x8x32xf32> to vector<8x32xf32>
    %156 = vector.shape_cast %153 : vector<8x32xf32> to vector<1x8x32xf32>
    tpu.vector_store %arg18[%c0_76, %c0_77, %c0_78], %156 {strides = array<i32>} : memref<1x8x32xf32, #tpu.memory_space<vmem>>, vector<1x8x32xf32>,
    return
  }
  func.func @transform_0(%arg0: i32, %arg1: i32) -> (i32, i32, i32) {
    %c0_i32 = arith.constant 0 : i32
    %c0_i32_0 = arith.constant 0 : i32
    return %arg0, %arg1, %c0_i32 : i32, i32, i32
  }
  func.func @transform_1(%arg0: i32, %arg1: i32) -> (i32, i32, i32) {
    %c0_i32 = arith.constant 0 : i32
    %c0_i32_0 = arith.constant 0 : i32
    %c0_i32_1 = arith.constant 0 : i32
    return %arg0, %c0_i32, %c0_i32_0 : i32, i32, i32
  }
  func.func @transform_2(%arg0: i32, %arg1: i32) -> (i32, i32) {
    %c0_i32 = arith.constant 0 : i32
    %c0_i32_0 = arith.constant 0 : i32
    %c0_i32_1 = arith.constant 0 : i32
    return %c0_i32, %c0_i32_0 : i32, i32
  }
  func.func @transform_3(%arg0: i32, %arg1: i32) -> (i32, i32) {
    %c0_i32 = arith.constant 0 : i32
    %c0_i32_0 = arith.constant 0 : i32
    %c0_i32_1 = arith.constant 0 : i32
    return %c0_i32, %c0_i32_0 : i32, i32
  }
  func.func @transform_4(%arg0: i32, %arg1: i32) -> (i32, i32) {
    %c0_i32 = arith.constant 0 : i32
    %c0_i32_0 = arith.constant 0 : i32
    %c0_i32_1 = arith.constant 0 : i32
    return %c0_i32, %c0_i32_0 : i32, i32
  }
  func.func @transform_5(%arg0: i32, %arg1: i32) -> (i32, i32) {
    %c0_i32 = arith.constant 0 : i32
    %c0_i32_0 = arith.constant 0 : i32
    %c0_i32_1 = arith.constant 0 : i32
    return %c0_i32, %c0_i32_0 : i32, i32
  }
  func.func @transform_6(%arg0: i32, %arg1: i32) -> (i32, i32) {
    %c0_i32 = arith.constant 0 : i32
    %c0_i32_0 = arith.constant 0 : i32
    %c0_i32_1 = arith.constant 0 : i32
    return %c0_i32, %c0_i32_0 : i32, i32
  }
  func.func @transform_7(%arg0: i32, %arg1: i32) -> (i32, i32) {
    %c0_i32 = arith.constant 0 : i32
    %c0_i32_0 = arith.constant 0 : i32
    %c0_i32_1 = arith.constant 0 : i32
    return %c0_i32, %c0_i32_0 : i32, i32
  }
  func.func @transform_8(%arg0: i32, %arg1: i32) -> (i32, i32) {
    %c0_i32 = arith.constant 0 : i32
    %c0_i32_0 = arith.constant 0 : i32
    %c0_i32_1 = arith.constant 0 : i32
    return %c0_i32, %c0_i32_0 : i32, i32
  }
  func.func @transform_9(%arg0: i32, %arg1: i32) -> (i32, i32) {
    %c0_i32 = arith.constant 0 : i32
    %c0_i32_0 = arith.constant 0 : i32
    %c0_i32_1 = arith.constant 0 : i32
    return %c0_i32, %c0_i32_0 : i32, i32
  }
  func.func @transform_10(%arg0: i32, %arg1: i32) -> (i32, i32) {
    %c0_i32 = arith.constant 0 : i32
    %c0_i32_0 = arith.constant 0 : i32
    %c0_i32_1 = arith.constant 0 : i32
    return %c0_i32, %c0_i32_0 : i32, i32
  }
  func.func @transform_11(%arg0: i32, %arg1: i32) -> (i32, i32) {
    %c0_i32 = arith.constant 0 : i32
    %c0_i32_0 = arith.constant 0 : i32
    %c0_i32_1 = arith.constant 0 : i32
    return %c0_i32, %c0_i32_0 : i32, i32
  }
  func.func @transform_12(%arg0: i32, %arg1: i32) -> (i32, i32) {
    %c0_i32 = arith.constant 0 : i32
    %c0_i32_0 = arith.constant 0 : i32
    %c0_i32_1 = arith.constant 0 : i32
    return %c0_i32, %c0_i32_0 : i32, i32
  }
  func.func @transform_13(%arg0: i32, %arg1: i32) -> (i32, i32) {
    %c0_i32 = arith.constant 0 : i32
    %c0_i32_0 = arith.constant 0 : i32
    %c0_i32_1 = arith.constant 0 : i32
    return %c0_i32, %c0_i32_0 : i32, i32
  }
  func.func @transform_14(%arg0: i32, %arg1: i32) -> (i32, i32) {
    %c0_i32 = arith.constant 0 : i32
    %c0_i32_0 = arith.constant 0 : i32
    %c0_i32_1 = arith.constant 0 : i32
    return %c0_i32, %c0_i32_0 : i32, i32
  }
  func.func @transform_15(%arg0: i32, %arg1: i32) -> (i32, i32) {
    %c0_i32 = arith.constant 0 : i32
    %c0_i32_0 = arith.constant 0 : i32
    %c0_i32_1 = arith.constant 0 : i32
    return %c0_i32, %c0_i32_0 : i32, i32
  }
  func.func @transform_16(%arg0: i32, %arg1: i32) -> (i32, i32, i32) {
    %c0_i32 = arith.constant 0 : i32
    %c0_i32_0 = arith.constant 0 : i32
    return %arg0, %arg1, %c0_i32 : i32, i32, i32
  }
}

</mosaic_0001>

<bundles_post_ra>
// kernel: tpu_custom_call.1
= control target key start
LH: loop header
LB: loop body
LE: loop exit
PB: predicated region body
PF: predicated region fallthrough
CT: control target
= control target key end

     0   :  { %s2644_s0 = inlined_call_operand.vmem [shape: f32[2,8,32], index: 0, kind: input, shape index: {}]   ;;  %s2645_s1 = inlined_call_operand.hbm [shape: bf16[2,8,32], index: 1, kind: input, shape index: {}]   ;;  %s2646_s2 = inlined_call_operand.vmem [shape: bf16[32,32], index: 2, kind: input, shape index: {}]   ;;  %s2647_s3 = inlined_call_operand.vmem [shape: f32[1,32], index: 3, kind: input, shape index: {}]   ;;  %s2648_s4 = inlined_call_operand.vmem [shape: bf16[32,64], index: 4, kind: input, shape index: {}]   ;;  %s2649_s5 = inlined_call_operand.vmem [shape: f32[1,64], index: 5, kind: input, shape index: {}]   ;;  %s2650_s6 = inlined_call_operand.hbm [shape: bf16[32,32], index: 6, kind: input, shape index: {}]   ;;  %s2651_s7 = inlined_call_operand.vmem [shape: f32[1,32], index: 7, kind: input, shape index: {}]   ;;  %s2652_s8 = inlined_call_operand.hbm [shape: bf16[32,64], index: 8, kind: input, shape index: {}]   ;;  %s2653_s9 = inlined_call_operand.vmem [shape: f32[1,64], index: 9, kind: input, shape index: {}]   ;;  %s2654_s10 = inlined_call_operand.vmem [shape: bf16[64,32], index: 10, kind: input, shape index: {}]   ;;  %s2655_s11 = inlined_call_operand.vmem [shape: f32[1,32], index: 11, kind: input, shape index: {}]   ;;  %s2656_s12 = inlined_call_operand.vmem [shape: f32[1,32], index: 12, kind: input, shape index: {}]   ;;  %s2657_s13 = inlined_call_operand.vmem [shape: f32[1,32], index: 13, kind: input, shape index: {}]   ;;  %s2658_s14 = inlined_call_operand.vmem [shape: f32[1,32], index: 14, kind: input, shape index: {}]   ;;  %s2659_s15 = inlined_call_operand.vmem [shape: f32[1,32], index: 15, kind: input, shape index: {}]   ;;  %s2660_s16 = inlined_call_operand.hbm [shape: f32[2,8,32], index: 16, kind: output, shape index: {}]  }
   0x1   :  { %2669 = sst [smem:[#allocation16_spill]] %s2644_s0 }
   0x2   :  { %2670 = sst [smem:[#allocation17_spill]] %s2645_s1 }
   0x3   :  { %2671 = sst [smem:[#allocation18_spill]] %s2653_s9 }
   0x4   :  { %2672 = sst [smem:[#allocation19_spill]] %s2654_s10 }
   0x5   :  { %2673 = sst [smem:[#allocation20_spill]] %s2655_s11 }
   0x6   :  { %2674 = sst [smem:[#allocation21_spill]] %s2656_s12 }
   0x7   :  { %2675 = sst [smem:[#allocation22_spill]] %s2657_s13 }
   0x8   :  { %2676 = sst [smem:[#allocation23_spill]] %s2658_s14 }
   0x9   :  { %2677 = sst [smem:[#allocation24_spill]] %s2659_s15 }
   0xa   :  { %2678 = sst [smem:[#allocation25_spill]] %s2660_s16 }
   0xb   :  { %21 = vsyncpa [#allocation5], 0 }
   0xc   :  { %23 = vsyncpa [#allocation5 + $0x1], 0 }
   0xd   :  { %24 = vsyncpa [#allocation8], 0 }
   0xe   :  { %25 = vsyncpa [#allocation6], 0 }
   0xf   :  { %27 = vsyncpa [#allocation6 + $0x1], 0  ;;  %s2245_s21 = smov 0   ;;  %s2247_s22 = smov 0  }
  0x10   :  { %s2249_s23 = smov 0   ;;  %s2251_s24 = smov 0  }
  0x11   :  { %s2253_s25 = smov 0   ;;  %s2255_s26 = smov 0  }
  0x12 LB: > { %2679 = sst [smem:[#allocation14_spill]] %s2120_s21  ;;  %s1648_s27 = sadd.s32 4294967295, %s2140_s26   ;;  %s2140_s26 = sphi %s2255_s26, %s33_s26   ;;  %s2136_s25 = sphi %s2253_s25, %s2710_s25   ;;  %s2132_s24 = sphi %s2251_s24, %s2709_s24   ;;  %s2128_s23 = sphi %s2249_s23, %s2708_s23   ;;  %s2124_s22 = sphi %s2247_s22, %s2707_s22   ;;  %s2120_s21 = sphi %s2245_s21, %s2706_s21  }
  0x13   : > { %s1649_s28 = sadd.s32 4294967294, %s2140_s26   ;;  %p93_p0 = scmp.ne.s32.totalorder %s2124_s22, %s2120_s21 }
  0x14   : > { %p2279_p1 = scmp.eq.s32.totalorder %s1648_s27, 0  ;;  %p2283_p2 = scmp.eq.s32.totalorder %s1648_s27, 1 }
  0x15   : > { %p419_p3 = scmp.eq.s32.totalorder %s1649_s28, 1  ;;  %p1650_p5 = scmp.ge.s32.totalorder %s2140_s26, 1 }
  0x16   : > { %s2680_s29 = scalar_select %p2279_p1, 1, 0 }
  0x17   : > { %p2289_p4 = por %p2279_p1, %p93_p0  ;;  %p2294_p6 = por %p419_p3, %p93_p0 }
  0x18   : > { %p426_p7 = scmp.lt.s32.totalorder %s2140_s26, 3  ;;  %s2142_s19 = smov [#allocation7]  }
  0x19   : > { %s2682_s0 = scalar_select %p2289_p4, 1, 0 }
  0x1a   : > { %s2683_s17 = scalar_select %p2294_p6, 1, 0 }
  0x1b   : > { %p2299_p8 = pnand %p1650_p5, %p426_p7  ;;  %s450_s20 = sshll.u32 %s2142_s19, 4  ;;  %s2303_s20 = int_to_ptr.vmem [resolvable:$true] %s450_s20 }
  0x1c   : > { %2684 = sst [smem:[#allocation15_spill]] %s2683_s17  ;;  %s2143_s28 = smov [#allocation9]  }
  0x1d   : > { %p1847_p9 = pneg %p2299_p8  ;;  %s466_s17 = sshll.u32 %s2143_s28, 4  ;;  %s2314_s17 = int_to_ptr.vmem [resolvable:$true] %s466_s17 }
  0x1e   : > { %s1968_s19 = scalar_lea.hbm %s2650_s6, 256 }
  0x1f   : > { %p2310_p11 = pnand %p1847_p9, %p2279_p1  ;;  %p1969_p12 = scmp.ne.s32.totalorder %s2650_s6, %s1968_s19 }
  0x20   : > { %p1975_p5 = scmp.lt.u32.totalorder %s1968_s19, %s2650_s6 }
  0x21   : > { %p1970_p13 = pneg %p2310_p11 }
  0x23   : > { %p1971_p0 = pnand %p1970_p13, %p1969_p12 }
  0x25   : > { %p1972_p3 = pneg %p1971_p0 }
  0x27   : > { %p1977_p7 = pnand %p1975_p5, %p1972_p3 }
  0x29   : > { %1980 = shalt.err (!%p1977_p7)
}
  0x2a   : > { %s1981_s16 = scalar_lea.vmem %s2303_s20, 256  ;;  %p1989_p1 = scmp.lt.s32.totalorder %s2303_s20, %s2303_s20 }
  0x2b   : > { %p1982_p9 = scmp.ne.s32.totalorder %s2303_s20, %s1981_s16  ;;  %p1990_p12 = scmp.lt.s32.totalorder %s1981_s16, %s1981_s16 }
  0x2d   : > { %p1984_p10 = pnand %p1982_p9, %p1970_p13  ;;  %p1991_p0 = por %p1990_p12, %p1989_p1 }
  0x2f   : > { %p1985_p6 = pneg %p1984_p10 }
  0x31   : > { %p1992_p4 = pnand %p1991_p0, %p1985_p6 }
  0x33   : > { %1995 = shalt.err (!%p1992_p4)
}
  0x34   : > { %s2144_s9 = smov 64   ;;  %s2145_s11 = smov 4  }
  0x35   : > { %1850 = dma.hbm_to_vmem [thread:$0]  (!%p2310_p11), %s2650_s6, 256, %s2303_s20, [#allocation8], %s2144_s9, %s2144_s9, %s2145_s11  }
  0x36   : > { %s1996_s19 = scalar_lea.hbm %s2652_s8, 256 }
  0x37   : > { %p1997_p1 = scmp.ne.s32.totalorder %s2652_s8, %s1996_s19  ;;  %p2003_p10 = scmp.lt.u32.totalorder %s1996_s19, %s2652_s8 }
  0x39   : > { %p1999_p4 = pnand %p1997_p1, %p1970_p13 }
  0x3b   : > { %p2000_p6 = pneg %p1999_p4 }
  0x3d   : > { %p2005_p3 = pnand %p2003_p10, %p2000_p6 }
  0x3f   : > { %2008 = shalt.err (!%p2005_p3)
}
  0x40   : > { %s2009_s20 = scalar_lea.vmem %s2314_s17, 256  ;;  %p2017_p12 = scmp.lt.s32.totalorder %s2314_s17, %s2314_s17 }
  0x41   : > { %p2010_p5 = scmp.ne.s32.totalorder %s2314_s17, %s2009_s20  ;;  %p2018_p0 = scmp.lt.s32.totalorder %s2009_s20, %s2009_s20 }
  0x43   : > { %p2012_p7 = pnand %p2010_p5, %p1970_p13  ;;  %p2019_p1 = por %p2018_p0, %p2017_p12 }
  0x45   : > { %p2013_p9 = pneg %p2012_p7 }
  0x47   : > { %p2020_p4 = pnand %p2019_p1, %p2013_p9 }
  0x49   : > { %2023 = shalt.err (!%p2020_p4)
}
  0x4a   : > { %1853 = dma.hbm_to_vmem [thread:$0]  (!%p2310_p11), %s2652_s8, 256, %s2314_s17, [#allocation8], %s2144_s9, %s2144_s9, %s2145_s11  }
  0x4b   : > { %s45_s13 = sadd.s32 1, %s2136_s25  ;;  %s80_s14 = sadd.s32 1, %s2128_s23 }
  0x4c   : > { %p47_p13 = scmp.ge.s32.totalorder %s45_s13, 2  ;;  %p87_p6 = scmp.ne.s32.totalorder %s2128_s23, %s2124_s22 }
  0x4d   : > { %p88_p10 = scmp.eq.s32.totalorder %s2140_s26, 0  ;;  %p1864_p3 = scmp.lt.s32.totalorder %s2140_s26, 2 }
  0x4e   : > { %s2712_s13 = smov (%p47_p13, %s45_s13), 0  ;;  %p2378_p7 = por %p2283_p2, %p87_p6 }
  0x4f   : > { %p89_p5 = por %p88_p10, %p87_p6  ;;  %s77_s15 = ssub.s32 %s2136_s25, %s2712_s13 }
  0x50   : > { %s2687_s27 = scalar_select %p2378_p7, 1, 0 }
  0x51   : > { %s511_s21 = sand.u32 1, %s2128_s23   ;;  %p78_p9 = scmp.eq.s32.totalorder %s77_s15, 0 }
  0x52   : > { %s1654_s17 = sshll.u32 %s511_s21, 2  ;;  %s1655_s9 = sshll.u32 %s2136_s25, 6 }
  0x53   : > { %s2387_s11 = scalar_select %p78_p9, %s2128_s23, %s80_s14  }
  0x54   : > { %s2688_s1 = sld [smem:[#allocation17_spill]]  ;;  %s515_s30 = scalar_lea.vmem [#allocation4], %s1654_s17 }
  0x55   : > { %s522_s20 = sshll.u32 %s515_s30, 4  ;;  %p2396_p2 = pnand %p1864_p3, %p89_p5  ;;  %s2400_s20 = int_to_ptr.vmem [resolvable:$true] %s522_s20 }
  0x56   : > { %s512_s12 = scalar_lea.sflag [#allocation5], %s511_s21 }
  0x57   : > { %p2026_p12 = pneg %p2396_p2 }
  0x5a   : > { %s2392_s16 = scalar_lea.hbm %s2688_s1, %s1655_s9  ;;  %s2029_s9 = scalar_lea.hbm %s2688_s1, 128 }
  0x5b   : > { %s2024_s14 = scalar_lea.hbm %s2392_s16, 64  ;;  %p2030_p4 = scmp.lt.u32.totalorder %s2392_s16, %s2688_s1 }
  0x5c   : > { %p2025_p11 = scmp.ne.s32.totalorder %s2392_s16, %s2024_s14  ;;  %p2031_p13 = scmp.lt.u32.totalorder %s2029_s9, %s2024_s14 }
  0x5d   : > { %p2033_p10 = scmp.lt.u32.totalorder %s2024_s14, %s2392_s16 }
  0x5e   : > { %p2027_p0 = pnand %p2026_p12, %p2025_p11  ;;  %p2032_p6 = por %p2031_p13, %p2030_p4 }
  0x60   : > { %p2028_p1 = pneg %p2027_p0  ;;  %p2034_p3 = por %p2033_p10, %p2032_p6 }
  0x62   : > { %p2035_p5 = pnand %p2034_p3, %p2028_p1 }
  0x64   : > { %2038 = shalt.err (!%p2035_p5)
}
  0x65   : > { %s2039_s21 = scalar_lea.vmem %s2400_s20, 64  ;;  %s2146_s30 = smov [#allocation4]  }
  0x66   : > { %p2040_p9 = scmp.ne.s32.totalorder %s2400_s20, %s2039_s21  ;;  %s2044_s15 = sshll.u32 %s2146_s30, 4  ;;  %s2045_s15 = int_to_ptr.vmem [resolvable:$false] %s2044_s15 }
  0x67   : > { %s2046_s17 = scalar_lea.vmem %s2045_s15, 128  ;;  %p2047_p7 = scmp.lt.s32.totalorder %s2400_s20, %s2045_s15 }
  0x68   : > { %p2042_p11 = pnand %p2040_p9, %p2026_p12  ;;  %p2048_p4 = scmp.lt.s32.totalorder %s2046_s17, %s2039_s21 }
  0x6a   : > { %p2043_p0 = pneg %p2042_p11  ;;  %p2049_p13 = por %p2048_p4, %p2047_p7 }
  0x6c   : > { %p2050_p6 = pnand %p2049_p13, %p2043_p0 }
  0x6e   : > { %2053 = shalt.err (!%p2050_p6)
}
  0x6f   : > { %1857 = dma.hbm_to_vmem [thread:$0]  (!%p2396_p2), %s2392_s16, 64, %s2400_s20, %s512_s12  }
  0x70   : > { %531 = sbr.rel (%p2299_p8) target bundleno = 2508 (0x9cc), region = 84  ;;  %s2430_s14 = sand.u32 (!%p2299_p8), 1, %s2124_s22  }
  0x71   : > { %s1657_s9 = sshll.u32 (!%p2299_p8), %s2430_s14, 2  ;;  %s534_s28 = scalar_lea.sflag (!%p2299_p8), [#allocation5], %s2430_s14 }
  0x72   : > { %s537_s19 = scalar_lea.vmem (!%p2299_p8), [#allocation4], %s1657_s9  ;;  %p2690_p7 = scmp.ne.s32.totalorder (!%p2299_p8), %s2682_s0, 0 }
  0x77   : > { %2107 = dma.done.wait (%p2690_p7), %s534_s28, 64  }
  0x78   : > { %2109 = vsyncadd (%p2690_p7), %s534_s28, 4294967232  ;;  %p2691_p12 = scmp.ne.s32.totalorder %s2680_s29, 0 }
  0x7a   : > { %2111 = dma.done.wait (%p2691_p12), [#allocation8], 512  }
  0x7b   : > { %2113 = vsyncadd (%p2691_p12), [#allocation8], 4294966784  ;;  %v2147_v0 = vmov 0.0   ;;  %vm2148_vm0 = vmmov 0   ;;  %p601_p8 = scmp.lt.s32.totalorder %s2132_s24, 1  ;;  %v1932_v1 = vld [vmem:[%s2648_s4] sm:$0xff]  }
  0x7c   : > { %1743 = vmatprep.subr.bf16.mxu1 %v2147_v0  ;;  %1747 = vmatprep.mubr.msk.bf16.mxu1 %vm2148_vm0, %v2147_v0  ;;  %v1933_v2 = vld [vmem:[%s2648_s4 + $0x8] sm:$0xff]   ;;  %vm637_vm1 = vcmask 261120   ;;  %v1934_v4 = vld [vmem:[%s2646_s2] sm:$0xff]   ;;  %s2692_s17 = sld [smem:[#allocation16_spill]]  ;;  %vm682_vm2 = vcmask 519168   ;;  %vm755_vm3 = vcmask 64512  }
  0x7d   : > { %1759 = vmatprep.subr.bf16.mxu0 %v2147_v0  ;;  %1761 = vmatprep.mubr.msk.bf16.mxu0 %vm2148_vm0, %v2147_v0  ;;  %s602_s29 = scalar_select %p601_p8, %s2132_s24, 1  ;;  %v613_v3 = vld [vmem:[%s537_s19] sm:$0xf]  ;;  %v1662_v8 = vld [vmem:[%s2649_s5] ss:$0 sm:$0xff]  ;;  %vm821_vm4 = vcmask 1043456  }
  0x7e   : > { %1744 = vmatpush3.bf16.msra.mxu1 %v1932_v1  ;;  %v1935_v5 = vld [vmem:[%s2646_s2 + $0x8] sm:$0xff]   ;;  %v1666_v15 = vld [vmem:[%s2647_s3] ss:$0 sm:$0xff]  ;;  %s2149_s20 = smov 112   ;;  %s2150_s10 = smov 120   ;;  %vm867_vm5 = vcmask 60416  }
  0x7f   : > { %1745 = vmatprep.subr.bf16.mxu1 %v2147_v0  ;;  %s1661_s21 = sshll.u32 %s602_s29, 3  ;;  %s2151_s12 = smov 104   ;;  %vm991_vm6 = vcmask 126016   ;;  %vm1114_vm7 = vcmask 191616   ;;  %vm1237_vm8 = vcmask 257216   ;;  %vm1445_vm9 = vcmask 523264  }
  0x80   : > { %s2153_s30 = smov 80   ;;  %s2154_s15 = smov 72  }
  0x81   : > { %s2157_s28 = smov 16   ;;  %s2158_s0 = smov 24  }
  0x82   : > { %1746 = vmatpush3.bf16.msra.mxu1 %v1933_v2  ;;  %s607_s9 = scalar_lea.vmem %s2692_s17, %s1661_s21  ;;  %s2152_s21 = smov 96  }
  0x83   : > { %1751 = vmatprep.subr.bf16.mxu1 %v2147_v0  ;;  %v2470_v6 = vld [vmem:[%s607_s9] sm:$0xff]  ;;  %s2155_s17 = smov 88   ;;  %s2156_s9 = smov 8  }
  0x84   : > { %v685_v7 = vpack.c.bf16 %v2470_v6, %v2470_v6  ;;  %s2699_s29 = sld [smem:[#allocation24_spill]]  ;;  %s1704_s16 = sshll.u32 %s2132_s24, 7 }
  0x85   : > { %1748 = vmatmul.mubr.msk.bf16.vlgmr.msra.gmra.mrb[0].mxu1 %vm637_vm1, %v613_v3  ;;  %p2701_p1 = scmp.ne.s32.totalorder %s2687_s27, 0  ;;  %s2159_s24 = smov [#allocation10]  }
  0x86   : > { %1752 = vmatpush3.bf16.msra.mxu1 %v1934_v4  ;;  %1755 = vmatprep.mubr.msk.bf16.mxu1 %vm2148_vm0, %v2147_v0 }
  0x87   : > { %1753 = vmatprep.subr.bf16.mxu1 %v2147_v0 }
  0x8a   : > { %1754 = vmatpush3.bf16.msra.mxu1 %v1935_v5 }
  0x8b   : > { %1765 = vmatprep.subr.bf16.mxu1 %v2147_v0 }
  0x8d   : > { %1756 = vmatmul.mubr.msk.bf16.vlgmr.msra.gmra.mrb[4].mxu1 %vm637_vm1, %v685_v7 }
  0x8e   : > { %1767 = vmatprep.mubr.msk.bf16.mxu1 %vm2148_vm0, %v2147_v0 }
 0x158   : > { %v675_v9 = vpop.f32.mrb[0].mxu1 }
 0x159   : > { %v676_v10 = vadd.f32 %v1662_v8, %v675_v9  ;;  %v1749_v11 = vpop.f32.mrb[1].mxu1 }
 0x15a   : > { %v678_v12 = vpop.f32.mrb[2].mxu1 }
 0x15b   : > { %v681_v13 = vpack.c.bf16 %v676_v10, %v676_v10  ;;  %v1750_v14 = vpop.f32.mrb[3].mxu1 }
 0x15d   : > { %683 = vst.msk [vmem:[#allocation2] sm:$0xf] %vm682_vm2, %v681_v13 }
 0x160   : > { %v747_v16 = vpop.f32.mrb[4].mxu1 }
 0x161   : > { %v1757_v17 = vpop.f32.mrb[5].mxu1  ;;  %v748_v18 = vadd.f32 %v1666_v15, %v747_v16 }
 0x162   : > { %v750_v19 = vpop.f32.mrb[6].mxu1 }
 0x163   : > { %v1758_v20 = vpop.f32.mrb[7].mxu1  ;;  %v753_v25 = vpack.c.bf16 %v748_v18, %v748_v18 }
 0x164   : > { %v754_v21 = vld [vmem:[#allocation2] sm:$0xf] }
 0x165   : > { %v2485_v22 = vld [vmem:[#allocation2] ss:$0 sps:$4 sm:$0xff]   ;;  %v760_v23 = vsel %vm755_vm3, %v754_v21, 0  ;;  %v1671_v27 = vcombine.low %v754_v21, %v754_v21 }
 0x166   : > { %v2488_v24 = vld [vmem:[#allocation2] ss:$0 sps:$4 sm:$0xff]   ;;  %1760 = vmatpush3.bf16.xpose.msra.mxu0 %v760_v23  ;;  %999 = vrot.lane.b32.xlu1 %v2485_v22, %s2149_s20 }
 0x167   : > { %876 = vrot.lane.b32.xlu0 %v2488_v24, %s2150_s10  ;;  %1771 = vmatprep.subr.bf16.mxu0 %v2147_v0  ;;  %v1939_v26 = vld [vmem:[#allocation2] ss:$0 sps:$4 sm:$0xff]  }
 0x16a   : > { %994 = vrot.lane.b32.xlu1 %v753_v25, %s2149_s20  ;;  %s2693_s20 = sld [smem:[#allocation19_spill]] }
 0x16b   : > { %871 = vrot.lane.b32.xlu0 %v753_v25, %s2150_s10 }
 0x16d   : > { %1762 = vmatmul.mubr.msk.bf16.vlgmr.msra.gmra.mrb[0].mxu0 %vm755_vm3, %v753_v25 }
 0x16e   : > { %1117 = vrot.lane.b32.xlu1 %v753_v25, %s2151_s12  ;;  %1773 = vmatprep.mubr.msk.bf16.mxu0 %vm2148_vm0, %v2147_v0 }
 0x16f   : > { %1122 = vrot.lane.b32.xlu0 %v1939_v26, %s2151_s12  ;;  %s2696_s12 = sld [smem:[#allocation18_spill]] }
 0x172   : > { %816 = vrot.lane.b32.xlu1 %v1671_v27, %s2152_s21 }
 0x1d8   : > { %v1000_v28 = vpop.permute.xlu1 %999 }
 0x1d9   : > { %v877_v29 = vpop.permute.xlu0 %876  ;;  %v1005_v34 = vsel %vm755_vm3, %v1000_v28, 0 }
 0x1da   : > { %v882_v30 = vsel %vm755_vm3, %v877_v29, 0 }
 0x1db   : > { %1772 = vmatpush3.bf16.xpose.msra.mxu0 %v882_v30 }
 0x1dc   : > { %v995_v31 = vpop.permute.xlu1 %994  ;;  %1783 = vmatprep.subr.bf16.mxu0 %v2147_v0 }
 0x1dd   : > { %v872_v33 = vpop.permute.xlu0 %871 }
 0x1e0   : > { %v1118_v32 = vpop.permute.xlu1 %1117 }
 0x1e1   : > { %v1123_v37 = vpop.permute.xlu0 %1122 }
 0x1e2   : > { %1774 = vmatmul.mubr.msk.bf16.vlgmr.msra.gmra.mrb[4].mxu0 %vm755_vm3, %v872_v33  ;;  %v1128_v38 = vsel %vm755_vm3, %v1123_v37, 0 }
 0x1e3   : > { %1784 = vmatpush3.bf16.xpose.msra.mxu0 %v1005_v34  ;;  %1785 = vmatprep.mubr.msk.bf16.mxu0 %vm2148_vm0, %v2147_v0 }
 0x1e4   : > { %v817_v35 = vpop.permute.xlu1 %816  ;;  %1795 = vmatprep.subr.bf16.mxu0 %v2147_v0 }
 0x1e5   : > { %v823_v36 = vsel %vm821_vm4, %v817_v35, 0 }
 0x1e6   : > { %1766 = vmatpush3.bf16.msra.mxu1 %v823_v36 }
 0x1e7   : > { %1777 = vmatprep.subr.bf16.mxu1 %v2147_v0 }
 0x1ea   : > { %1786 = vmatmul.mubr.msk.bf16.vlgmr.msra.gmra.mrb[8].mxu0 %vm755_vm3, %v995_v31 }
 0x1eb   : > { %1796 = vmatpush3.bf16.xpose.msra.mxu0 %v1128_v38  ;;  %1797 = vmatprep.mubr.msk.bf16.mxu0 %vm2148_vm0, %v2147_v0 }
 0x1ec   : > { %1807 = vmatprep.subr.bf16.mxu0 %v2147_v0 }
 0x1f2   : > { %1798 = vmatmul.mubr.msk.bf16.vlgmr.msra.gmra.mrb[12].mxu0 %vm755_vm3, %v1118_v32 }
 0x1f3   : > { %1811 = vmatprep.mubr.msk.bf16.mxu0 %vm2148_vm0, %v2147_v0 }
 0x240   : > { %v796_v39 = vpop.f32.mrb[0].mxu0 }
 0x241   : > { %v1763_v40 = vpop.f32.mrb[1].mxu0  ;;  %v802_v41 = vsel %vm755_vm3, %v796_v39, -inf }
 0x242   : > { %803 = vmax.xlane.f32.xlu0 %v802_v41  ;;  %v799_v42 = vpop.f32.mrb[2].mxu0 }
 0x243   : > { %v1764_v43 = vpop.f32.mrb[3].mxu0 }
 0x2b5   : > { %v918_v44 = vpop.f32.mrb[4].mxu0 }
 0x2b6   : > { %v1775_v45 = vpop.f32.mrb[5].mxu0  ;;  %v924_v46 = vsel %vm755_vm3, %v918_v44, -inf }
 0x2b7   : > { %925 = vmax.xlane.f32.xlu1 %v924_v46  ;;  %v921_v47 = vpop.f32.mrb[6].mxu0 }
 0x2b8   : > { %v1776_v48 = vpop.f32.mrb[7].mxu0  ;;  %v1940_v47 = vld [vmem:[#allocation7] sm:$0xff]  }
 0x2b9   : > { %1808 = vmatpush3.bf16.msra.mxu0 %v1940_v47 }
 0x2ba   : > { %1809 = vmatprep.subr.bf16.mxu0 %v2147_v0 }
 0x2bd   : > { %v1041_v49 = vpop.f32.mrb[8].mxu0 }
 0x2be   : > { %v1787_v50 = vpop.f32.mrb[9].mxu0  ;;  %v1047_v51 = vsel %vm755_vm3, %v1041_v49, -inf }
 0x2bf   : > { %1048 = vmax.xlane.f32.xlu0 %v1047_v51  ;;  %v1044_v52 = vpop.f32.mrb[10].mxu0  ;;  %v1941_v51 = vld [vmem:[#allocation7 + $0x8] sm:$0xff]  }
 0x2c0   : > { %v1788_v53 = vpop.f32.mrb[11].mxu0  ;;  %1810 = vmatpush3.bf16.msra.mxu0 %v1941_v51 }
 0x2c1   : > { %1823 = vmatprep.subr.bf16.mxu0 %v2147_v0 }
 0x2c5   : > { %v1164_v54 = vpop.f32.mrb[12].mxu0 }
 0x2c6   : > { %v1799_v55 = vpop.f32.mrb[13].mxu0  ;;  %v1170_v56 = vsel %vm755_vm3, %v1164_v54, -inf }
 0x2c7   : > { %1171 = vmax.xlane.f32.xlu0 %v1170_v56  ;;  %v1167_v57 = vpop.f32.mrb[14].mxu0 }
 0x2c8   : > { %1058 = vrot.lane.b32.xlu1 %v2485_v22, %s2153_s30  ;;  %v1800_v58 = vpop.f32.mrb[15].mxu0 }
 0x2cc   : > { %1181 = vrot.lane.b32.xlu1 %v1939_v26, %s2154_s15  ;;  %s2694_s15 = sld [smem:[#allocation21_spill]] }
 0x2cf   : > { %v804_v59 = vpop.xlane.xlu0 %803 }
 0x2d0   : > { %v805_v60 = vsub.f32 %v796_v39, %v804_v59 }
 0x2d2   : > { %v806_v61 = vmul.f32 1.442695, %v805_v60 }
 0x2d4   : > { %1948 = vpow2.f32 %v806_v61 }
 0x2dd   : > { %935 = vrot.lane.b32.xlu0 %v2488_v24, %s2155_s17  ;;  %s1660_s17 = sshll.u32 %s2430_s14, 3 }
 0x2de   : > { %v1949_v62 = vpop.eup %1948  ;;  %s600_s10 = scalar_lea.vmem [#allocation10], %s1660_s17  ;;  %s2058_s17 = sshll.u32 %s2159_s24, 4  ;;  %s2059_s17 = int_to_ptr.vmem [resolvable:$false] %s2058_s17 }
 0x2df   : > { %v812_v63 = vpack.c.bf16 %v1949_v62, %v1949_v62  ;;  %v808_v25 = vsel %vm755_vm3, %v1949_v62, 0.0 }
 0x2e1   : > { %1768 = vmatmul.mubr.msk.bf16.vlgmr.msra.gmra.mrb[8].mxu1 %vm755_vm3, %v812_v63 }
 0x2e2   : > { %1779 = vmatprep.mubr.msk.bf16.mxu1 %vm2148_vm0, %v2147_v0 }
 0x344   : > { %v926_v1 = vpop.xlane.xlu1 %925 }
 0x345   : > { %v927_v2 = vsub.f32 %v918_v44, %v926_v1 }
 0x347   : > { %v928_v3 = vmul.f32 1.442695, %v927_v2  ;;  %v1685_v2 = vld [vmem:[%s2651_s7] ss:$0 sm:$0xff] }
 0x348   : > { %v1059_v15 = vpop.permute.xlu1 %1058 }
 0x349   : > { %1950 = vpow2.f32 %v928_v3  ;;  %v1064_v19 = vsel %vm821_vm4, %v1059_v15, 0 }
 0x34c   : > { %v1049_v4 = vpop.xlane.xlu0 %1048  ;;  %v1182_v20 = vpop.permute.xlu1 %1181 }
 0x34d   : > { %v1050_v5 = vsub.f32 %v1041_v49, %v1049_v4  ;;  %v1187_v24 = vsel %vm821_vm4, %v1182_v20, 0 }
 0x34f   : > { %v1051_v7 = vmul.f32 1.442695, %v1050_v5 }
 0x351   : > { %1952 = vpow2.f32 %v1051_v7 }
 0x353   : > { %v1951_v8 = vpop.eup %1950 }
 0x354   : > { %v1172_v9 = vpop.xlane.xlu0 %1171  ;;  %v930_v10 = vsel %vm755_vm3, %v1951_v8, 0.0  ;;  %v934_v17 = vpack.c.bf16 %v1951_v8, %v1951_v8 }
 0x355   : > { %v1173_v11 = vsub.f32 %v1164_v54, %v1172_v9  ;;  %931 = vadd.xlane.f32.xlu0 %v930_v10 }
 0x357   : > { %v1174_v12 = vmul.f32 1.442695, %v1173_v11 }
 0x358   : > { %v936_v13 = vpop.permute.xlu0 %935 }
 0x359   : > { %1954 = vpow2.f32 %v1174_v12  ;;  %v941_v14 = vsel %vm821_vm4, %v936_v13, 0 }
 0x35a   : > { %1778 = vmatpush3.bf16.msra.mxu1 %v941_v14 }
 0x35b   : > { %v1953_v16 = vpop.eup %1952  ;;  %1789 = vmatprep.subr.bf16.mxu1 %v2147_v0 }
 0x35c   : > { %v1053_v18 = vsel %vm755_vm3, %v1953_v16, 0.0  ;;  %v1057_v22 = vpack.c.bf16 %v1953_v16, %v1953_v16  ;;  %v1942_v16 = vld [vmem:[#allocation9] sm:$0xff]  }
 0x35d   : > { %1054 = vadd.xlane.f32.xlu1 %v1053_v18  ;;  %1780 = vmatmul.mubr.msk.bf16.vlgmr.msra.gmra.mrb[12].mxu1 %vm755_vm3, %v934_v17  ;;  %v1943_v17 = vld [vmem:[#allocation9 + $0x8] sm:$0xff]  }
 0x35e   : > { %1790 = vmatpush3.bf16.msra.mxu1 %v1064_v19  ;;  %1791 = vmatprep.mubr.msk.bf16.mxu1 %vm2148_vm0, %v2147_v0  ;;  %v1945_v18 = vld [vmem:[%s2693_s20 + $0x8] sm:$0xff]  }
 0x35f   : > { %1801 = vmatprep.subr.bf16.mxu1 %v2147_v0 }
 0x363   : > { %v1955_v21 = vpop.eup %1954 }
 0x364   : > { %v1176_v23 = vsel %vm755_vm3, %v1955_v21, 0.0  ;;  %v1180_v26 = vpack.c.bf16 %v1955_v21, %v1955_v21 }
 0x365   : > { %1177 = vadd.xlane.f32.xlu0 %v1176_v23  ;;  %1792 = vmatmul.mubr.msk.bf16.vlgmr.msra.gmra.mrb[16].mxu1 %vm755_vm3, %v1057_v22  ;;  %v1689_v23 = vld [vmem:[%s2694_s15] ss:$0 sm:$0xff]  ;;  %s2697_s15 = sld [smem:[#allocation20_spill]] }
 0x366   : > { %1802 = vmatpush3.bf16.msra.mxu1 %v1187_v24  ;;  %1803 = vmatprep.mubr.msk.bf16.mxu1 %vm2148_vm0, %v2147_v0 }
 0x367   : > { %1815 = vmatprep.subr.bf16.mxu1 %v2147_v0 }
 0x369   : > { %809 = vadd.xlane.f32.xlu0 %v808_v25 }
 0x36d   : > { %1804 = vmatmul.mubr.msk.bf16.vlgmr.msra.gmra.mrb[20].mxu1 %vm755_vm3, %v1180_v26 }
 0x36e   : > { %1819 = vmatprep.mubr.msk.bf16.mxu1 %vm2148_vm0, %v2147_v0  ;;  %1816 = vmatpush3.bf16.msra.mxu1 %v1942_v16 }
 0x36f   : > { %1817 = vmatprep.subr.bf16.mxu1 %v2147_v0 }
 0x372   : > { %1818 = vmatpush3.bf16.msra.mxu1 %v1943_v17 }
 0x3b4   : > { %v859_v27 = vpop.f32.mrb[8].mxu1 }
 0x3b5   : > { %v1769_v28 = vpop.f32.mrb[9].mxu1 }
 0x3b6   : > { %v862_v29 = vpop.f32.mrb[10].mxu1 }
 0x3b7   : > { %v1770_v30 = vpop.f32.mrb[11].mxu1  ;;  %v1946_v29 = vld [vmem:[%s2693_s20 + $0x10] sm:$0xff]  }
 0x3b8   : > { %v1947_v30 = vld [vmem:[%s2693_s20 + $0x18] sm:$0xff]  }
 0x3e2   : > { %v932_v31 = vpop.xlane.xlu0 %931 }
 0x3ea   : > { %v1055_v37 = vpop.xlane.xlu1 %1054 }
 0x3f2   : > { %v1178_v32 = vpop.xlane.xlu0 %1177 }
 0x3f6   : > { %v810_v33 = vpop.xlane.xlu0 %809 }
 0x3f7   : > { %1956 = vrcp.f32 %v810_v33 }
 0x3f8   : > { %1958 = vrcp.f32 %v932_v31  ;;  %v1691_v31 = vld [vmem:[%s2696_s12] ss:$0 sm:$0xff]  ;;  %s1535_s12 = sshll.u32 %s600_s10, 4  ;;  %s2596_s12 = int_to_ptr.vmem [resolvable:$true] %s1535_s12 }
 0x3f9   : > { %1960 = vrcp.f32 %v1055_v37  ;;  %p2061_p5 = scmp.lt.s32.totalorder %s2596_s12, %s2059_s17 }
 0x3fa   : > { %1962 = vrcp.f32 %v1178_v32 }
 0x401   : > { %v1957_v34 = vpop.eup %1956 }
 0x402   : > { %v865_v35 = vmul.f32 %v1957_v34, %v859_v27  ;;  %v1959_v38 = vpop.eup %1958 }
 0x403   : > { %v1961_v45 = vpop.eup %1960 }
 0x404   : > { %v866_v36 = vpack.c.bf16 %v865_v35, %v865_v35  ;;  %v1963_v54 = vpop.eup %1962 }
 0x406   : > { %868 = vst.msk [vmem:[#allocation3] sm:$0xf] %vm867_vm5, %v866_v36 }
 0x430   : > { %v977_v39 = vpop.f32.mrb[12].mxu1 }
 0x431   : > { %v983_v40 = vmul.f32 %v1959_v38, %v977_v39  ;;  %v1781_v41 = vpop.f32.mrb[13].mxu1 }
 0x432   : > { %v980_v42 = vpop.f32.mrb[14].mxu1 }
 0x433   : > { %v1707_v43 = vpack.c.bf16 %v983_v40, %v983_v40  ;;  %v1782_v44 = vpop.f32.mrb[15].mxu1 }
 0x435   : > { %988 = vrot.lane.b32.xlu1 %v1707_v43, %s2156_s9  ;;  %s1521_s9 = scalar_lea.sflag [#allocation6], %s2430_s14 }
 0x438   : > { %v1100_v46 = vpop.f32.mrb[16].mxu1 }
 0x439   : > { %v1106_v48 = vmul.f32 %v1961_v45, %v1100_v46  ;;  %v1793_v49 = vpop.f32.mrb[17].mxu1 }
 0x43a   : > { %v1103_v50 = vpop.f32.mrb[18].mxu1 }
 0x43b   : > { %v1708_v52 = vpack.c.bf16 %v1106_v48, %v1106_v48  ;;  %v1794_v53 = vpop.f32.mrb[19].mxu1 }
 0x43d   : > { %1111 = vrot.lane.b32.xlu0 %v1708_v52, %s2157_s28  ;;  %s2695_s28 = sld [smem:[#allocation22_spill]] }
 0x440   : > { %v1223_v55 = vpop.f32.mrb[20].mxu1 }
 0x441   : > { %v1229_v56 = vmul.f32 %v1963_v54, %v1223_v55  ;;  %v1805_v57 = vpop.f32.mrb[21].mxu1 }
 0x442   : > { %v1226_v58 = vpop.f32.mrb[22].mxu1  ;;  %v1702_v57 = vld [vmem:[%s2699_s29] ss:$0 sm:$0xff] }
 0x443   : > { %v1709_v59 = vpack.c.bf16 %v1229_v56, %v1229_v56  ;;  %v1806_v60 = vpop.f32.mrb[23].mxu1  ;;  %v1690_v25 = vld [vmem:[%s2695_s28] ss:$0 sm:$0xff]  ;;  %s2054_s28 = scalar_lea.vmem %s2596_s12, 128 }
 0x444   : > { %p2055_p2 = scmp.ne.s32.totalorder %s2596_s12, %s2054_s28 }
 0x445   : > { %1234 = vrot.lane.b32.xlu1 %v1709_v59, %s2158_s0  ;;  %s2698_s0 = sld [smem:[#allocation23_spill]] }
 0x446   : > { %p2056_p10 = pnand %p2055_p2, %p2701_p1 }
 0x448   : > { %p2057_p3 = pneg %p2056_p10 }
 0x44b   : > { %v1701_v55 = vld [vmem:[%s2698_s0] ss:$0 sm:$0xff]  ;;  %s2060_s0 = scalar_lea.vmem %s2059_s17, 256 }
 0x44c   : > { %p2062_p9 = scmp.lt.s32.totalorder %s2060_s0, %s2054_s28 }
 0x44e   : > { %p2063_p11 = por %p2062_p9, %p2061_p5 }
 0x450   : > { %p2064_p0 = pnand %p2063_p11, %p2057_p3 }
 0x4a7   : > { %v989_v61 = vpop.permute.xlu1 %988 }
 0x4a8   : > { %992 = vst.msk [vmem:[#allocation3] sm:$0xf] %vm991_vm6, %v989_v61 }
 0x4af   : > { %v1112_v62 = vpop.permute.xlu0 %1111 }
 0x4b0   : > { %1115 = vst.msk [vmem:[#allocation3] sm:$0xf] %vm1114_vm7, %v1112_v62 }
 0x4b7   : > { %v1235_v63 = vpop.permute.xlu1 %1234 }
 0x4b8   : > { %1238 = vst.msk [vmem:[#allocation3] sm:$0xf] %vm1237_vm8, %v1235_v63 }
 0x4bf   : > { %v1239_v1 = vld [vmem:[#allocation3] sm:$0xf] }
 0x4c0   : > { %1812 = vmatmul.mubr.msk.bf16.vlgmr.msra.gmra.mrb[16].mxu0 %vm637_vm1, %v1239_v1 }
 0x4c1   : > { %1831 = vmatprep.mubr.msk.bf16.mxu0 %vm2148_vm0, %v2147_v0 }
 0x593   : > { %v1300_v3 = vpop.f32.mrb[16].mxu0 }
 0x594   : > { %v1301_v4 = vadd.f32 %v1685_v2, %v1300_v3  ;;  %v1813_v5 = vpop.f32.mrb[17].mxu0 }
 0x595   : > { %v1303_v7 = vpop.f32.mrb[18].mxu0 }
 0x596   : > { %v1814_v8 = vpop.f32.mrb[19].mxu0  ;;  %v1306_v9 = vadd.f32 %v1301_v4, %v2470_v6  ;;  %v1944_v6 = vld [vmem:[%s2693_s20] sm:$0xff]  }
 0x597   : > { %1824 = vmatpush3.bf16.msra.mxu0 %v1944_v6 }
 0x598   : > { %v1307_v10 = vsel %vm637_vm1, %v1306_v9, 0.0  ;;  %1825 = vmatprep.subr.bf16.mxu0 %v2147_v0 }
 0x599   : > { %1308 = vadd.xlane.f32.xlu1 %v1307_v10 }
 0x59b   : > { %1826 = vmatpush3.bf16.msra.mxu0 %v1945_v18 }
 0x59c   : > { %1827 = vmatprep.subr.bf16.mxu0 %v2147_v0 }
 0x59f   : > { %1828 = vmatpush3.bf16.msra.mxu0 %v1946_v29 }
 0x5a0   : > { %1829 = vmatprep.subr.bf16.mxu0 %v2147_v0  ;;  %v1695_v0 = vld [vmem:[%s2697_s15] ss:$0 sm:$0xff]  ;;  %s2700_s15 = sld [smem:[#allocation25_spill]] }
 0x5a3   : > { %1830 = vmatpush3.bf16.msra.mxu0 %v1947_v30 }
 0x5a6   : > { %s2594_s1 = scalar_lea.hbm %s2700_s15, %s1704_s16 }
 0x626   : > { %v1309_v11 = vpop.xlane.xlu1 %1308 }
 0x627   : > { %v1311_v12 = vmul.f32 0.03125, %v1309_v11 }
 0x629   : > { %v1312_v13 = vsub.f32 %v1306_v9, %v1311_v12 }
 0x62b   : > { %v1313_v14 = vmul.f32 %v1312_v13, %v1312_v13 }
 0x62d   : > { %v1314_v15 = vsel %vm637_vm1, %v1313_v14, 0.0 }
 0x62e   : > { %1315 = vadd.xlane.f32.xlu0 %v1314_v15 }
 0x6bb   : > { %v1316_v19 = vpop.xlane.xlu0 %1315 }
 0x6bc   : > { %v1317_v20 = vmul.f32 0.03125, %v1316_v19 }
 0x6be   : > { %v1318_v21 = vadd.f32 1e-05, %v1317_v20 }
 0x6c0   : > { %1964 = vrsqrt.f32 %v1318_v21 }
 0x6ca   : > { %v1965_v22 = vpop.eup %1964 }
 0x6cb   : > { %v1320_v24 = vmul.f32 %v1965_v22, %v1312_v13 }
 0x6cd   : > { %v1328_v26 = vmul.f32 %v1689_v23, %v1320_v24 }
 0x6cf   : > { %v1336_v27 = vadd.f32 %v1690_v25, %v1328_v26 }
 0x6d1   : > { %v1337_v28 = vpack.c.bf16 %v1336_v27, %v1336_v27 }
 0x6d3   : > { %1820 = vmatmul.mubr.msk.bf16.vlgmr.msra.gmra.mrb[24].mxu1 %vm637_vm1, %v1337_v28 }
 0x7a6   : > { %v1398_v32 = vpop.f32.mrb[24].mxu1 }
 0x7a7   : > { %v1399_v33 = vadd.f32 %v1691_v31, %v1398_v32  ;;  %v1821_v34 = vpop.f32.mrb[25].mxu1 }
 0x7a8   : > { %v1401_v35 = vpop.f32.mrb[26].mxu1 }
 0x7a9   : > { %v1404_v36 = vmax.f32 %v1399_v33, 0.0  ;;  %v1822_v37 = vpop.f32.mrb[27].mxu1 }
 0x7ab   : > { %v1405_v38 = vpack.c.bf16 %v1404_v36, %v1404_v36 }
 0x7ad   : > { %1832 = vmatmul.mubr.msk.bf16.vlgmr.msra.gmra.mrb[20].mxu0 %vm1445_vm9, %v1405_v38 }
 0x880   : > { %v1483_v39 = vpop.f32.mrb[20].mxu0 }
 0x881   : > { %v1484_v40 = vadd.f32 %v1695_v0, %v1483_v39  ;;  %v1833_v41 = vpop.f32.mrb[21].mxu0 }
 0x882   : > { %v1486_v42 = vpop.f32.mrb[22].mxu0 }
 0x883   : > { %v1834_v43 = vpop.f32.mrb[23].mxu0  ;;  %v1489_v44 = vadd.f32 %v1484_v40, %v1336_v27 }
 0x885   : > { %v1490_v45 = vsel %vm637_vm1, %v1489_v44, 0.0 }
 0x886   : > { %1491 = vadd.xlane.f32.xlu0 %v1490_v45 }
 0x913   : > { %v1492_v46 = vpop.xlane.xlu0 %1491 }
 0x914   : > { %v1493_v47 = vmul.f32 0.03125, %v1492_v46 }
 0x916   : > { %v1494_v48 = vsub.f32 %v1489_v44, %v1493_v47 }
 0x918   : > { %v1495_v49 = vmul.f32 %v1494_v48, %v1494_v48 }
 0x91a   : > { %v1496_v50 = vsel %vm637_vm1, %v1495_v49, 0.0 }
 0x91b   : > { %1497 = vadd.xlane.f32.xlu1 %v1496_v50 }
 0x9a8   : > { %v1498_v51 = vpop.xlane.xlu1 %1497 }
 0x9a9   : > { %v1499_v52 = vmul.f32 0.03125, %v1498_v51 }
 0x9ab   : > { %v1500_v53 = vadd.f32 1e-05, %v1499_v52 }
 0x9ad   : > { %1966 = vrsqrt.f32 %v1500_v53 }
 0x9b7   : > { %v1967_v54 = vpop.eup %1966 }
 0x9b8   : > { %v1502_v56 = vmul.f32 %v1967_v54, %v1494_v48 }
 0x9ba   : > { %v1510_v58 = vmul.f32 %v1701_v55, %v1502_v56 }
 0x9bc   : > { %v1518_v59 = vadd.f32 %v1702_v57, %v1510_v58 }
 0x9be   : > { %1519 = vst.msk [vmem:[%s600_s10] sm:$0xff] %vm637_vm1, %v1518_v59 }
 0x9bf   : > { %2067 = shalt.err (!%p2064_p0)
}
 0x9c0   : > { %s2068_s14 = scalar_lea.hbm %s2594_s1, 128  ;;  %s2072_s29 = scalar_lea.hbm %s2700_s15, 256 }
 0x9c1   : > { %p2069_p4 = scmp.ne.s32.totalorder %s2594_s1, %s2068_s14  ;;  %p2073_p7 = scmp.lt.u32.totalorder %s2594_s1, %s2700_s15 }
 0x9c2   : > { %p2074_p12 = scmp.lt.u32.totalorder %s2072_s29, %s2068_s14  ;;  %p2076_p2 = scmp.lt.u32.totalorder %s2068_s14, %s2594_s1 }
 0x9c3   : > { %p2070_p13 = pnand %p2069_p4, %p2701_p1 }
 0x9c4   : > { %p2075_p8 = por %p2074_p12, %p2073_p7 }
 0x9c5   : > { %p2071_p6 = pneg %p2070_p13 }
 0x9c6   : > { %p2077_p10 = por %p2076_p2, %p2075_p8 }
 0x9c8   : > { %p2078_p3 = pnand %p2077_p10, %p2071_p6 }
 0x9ca   : > { %2081 = shalt.err (!%p2078_p3)
}
 0x9cb   : > { %1845 = dma.vmem_to_hbm [thread:$0]  (%p2701_p1), %s2596_s12, 128, %s2594_s1, %s1521_s9  }
 0x9cc PF: > { %s2702_s21 = sld [smem:[#allocation14_spill]]  ;;  %s2703_s30 = sld [smem:[#allocation15_spill]] }
 0x9cd   : > { %p2705_p9 = scmp.ge.s32.totalorder %s2140_s26, 2 }
 0x9d2   : > { %s1547_s28 = sand.u32 1, %s2702_s21   ;;  %p2704_p5 = scmp.ne.s32.totalorder %s2703_s30, 0 }
 0x9d3   : > { %s1548_s24 = scalar_lea.sflag [#allocation6], %s1547_s28 }
 0x9d4   : > { %p1859_p11 = pnand %p2705_p9, %p2704_p5 }
 0x9d6   : > { %2115 = dma.done.wait (!%p1859_p11), %s1548_s24, 128  }
 0x9d7   : > { %2117 = vsyncadd (!%p1859_p11), %s1548_s24, 4294967168  ;;  %s33_s26 = sadd.s32 1, %s2140_s26   ;;  %s2706_s21 = smov %s2124_s22 }
 0x9d8   : > { %p30_p0 = scmp.ge.s32.totalorder %s33_s26, 4   ;;  %s2707_s22 = smov %s2128_s23 }
 0x9d9   : > { %s2708_s23 = smov %s2387_s11  ;;  %s2709_s24 = smov %s2136_s25 }
 0x9da   : > { %s2710_s25 = smov %s2712_s13  ;;  %32 = sbr.rel (!%p30_p0) target bundleno = 18 (0x12), region = 144 }
 0x9e1   :  { %1553 = vsyncpa [#allocation5], 1 }
 0x9e2   :  { %1555 = vsyncpa [#allocation5 + $0x1], 1 }
 0x9e3   :  { %1556 = vsyncpa [#allocation8], 1 }
 0x9e4   :  { %1557 = vsyncpa [#allocation6], 1 }
 0x9e5   :  { %1559 = vsyncpa [#allocation6 + $0x1], 1 }

</bundles_post_ra>
